<compile_context>
chip_gen: v7x
topology: tpu7x:2x2x1
jax: 0.10.0
libtpu: 0.0.40
codegen_flags: <defaults>
</compile_context>

<pallas_src>
import functools

import jax
import jax.numpy as jnp
from jax.experimental import pallas as pl
from jax.experimental.pallas import tpu as pltpu


_VALID_NON_LIN = ("tanh", "sigmoid", "relu", "none")


def _round_up(v, m):
    return ((v + m - 1) // m) * m


def _vmem_budget_bytes():
    """~80% of per-TensorCore VMEM (headroom for compiler temporaries)."""
    try:
        physical = int(pltpu.get_tpu_info().vmem_capacity_bytes)
    except Exception:
        physical = 64 << 20  # conservative: v7x per-TensorCore VMEM
    return max(32 << 20, int(physical * 0.80))


def _mapping_kernel(x_ref, wt_ref, o_ref, *, non_lin):
    # x_ref:  (tile_n, d)        -- one N tile, full contraction dim
    # wt_ref: (d, tile_j)        -- weight already in (in_dim, out_dim) layout
    # o_ref:  (tile_n, tile_j)
    # Plain (M,K)x(K,N) contraction -> direct MXU feed, no in-kernel transpose.
    y = jnp.dot(x_ref[...], wt_ref[...], preferred_element_type=jnp.float32)
    # Nonlinearity in f32 (v5e has no bf16 VPU/EUP path; EUP slot is ~free).
    if non_lin == "tanh":
        y = jnp.tanh(y)
    elif non_lin == "sigmoid":
        y = jax.nn.sigmoid(y)
    elif non_lin == "relu":
        y = jnp.maximum(y, 0.0)
    # non_lin == "none": identity
    o_ref[...] = y.astype(o_ref.dtype)


def mapping_forward(x, weight, *, non_lin="tanh", tile_n=None, tile_j=None,
                    max_resident_weight_bytes=None):
    """Pallas forward for the Mapping module (inference mode).

    x:      (N, emb_dim)
    weight: (emb_dim, emb_dim), PyTorch Linear layout (out_dim, in_dim)
    """
    if non_lin is None:
        non_lin = "none"
    if non_lin not in _VALID_NON_LIN:
        raise ValueError(f"unsupported non_lin: {non_lin!r}")
    assert x.ndim == 2
    n, d = x.shape
    assert weight.ndim == 2 and weight.shape == (d, d)

    out_dtype = x.dtype
    x_itemsize = x.dtype.itemsize
    w_itemsize = weight.dtype.itemsize

    # TODO(synk): nn.Dropout(input_dropout) is identity at eval/inference time;
    # training-mode stochastic dropout (pltpu.prng_*) is not implemented here.

    # One-time tiny transpose in the wrapper: pass W in (in_dim, out_dim)
    # layout so the kernel never re-lays-out the weight per grid step.
    w_t = jnp.transpose(weight)

    budget = _vmem_budget_bytes()
    slack = 4 << 20
    w_bytes = d * d * w_itemsize

    # --- weight residency / output-column tiling ---------------------------
    if max_resident_weight_bytes is None:
        max_resident_weight_bytes = budget // 2
    resident = w_bytes <= max_resident_weight_bytes

    if resident:
        tj = d
    else:
        tj = tile_j if tile_j is not None else (512 if d > 512 else d)
        tj = min(tj, d)
        if tj != d and tj % 128 != 0:
            raise ValueError("tile_j must be a multiple of 128 or equal emb_dim")
    grid_j = pl.cdiv(d, tj)
    w_block_bytes = d * tj * w_itemsize
    w_buffers = 1 if grid_j == 1 else 2

    # --- N tiling: as large as VMEM allows (amortize ~0.35us/step pipeline
    #     overhead), >= 2 tiles when there is enough work (v7x has 2 TCs). ---
    if tile_n is None:
        avail = budget - w_buffers * w_block_bytes - slack
        per_row = 2 * d * x_itemsize + 2 * tj * x_itemsize  # dbl-buf x + out
        cap = max(64, min(4096, avail // per_row)) if avail > 0 else 256
        cap = max(8, (cap // 8) * 8)
        tn = min(cap, n)
        if n > 1024:                       # split so both v7x cores get work
            tn = min(tn, _round_up(pl.cdiv(n, 2), 8))
        if tn < n:
            tn = max(8, (tn // 8) * 8)     # multiple of 8 unless full extent
    else:
        tn = min(int(tile_n), n)
        if tn < n and tn % 8 != 0:
            raise ValueError("tile_n must be a multiple of 8 (or >= N)")
    grid_n = pl.cdiv(n, tn)

    # --- block specs --------------------------------------------------------
    # W: constant row-block index; when it is VMEM-resident and large, keep a
    # single buffer (it is only fetched once) to free VMEM for bigger N tiles.
    w_spec_kwargs = {}
    if grid_j == 1 and w_block_bytes >= (4 << 20):
        w_spec_kwargs["pipeline_mode"] = pl.Buffered(1)
    w_spec = pl.BlockSpec((d, tj), lambda i, j: (0, j), **w_spec_kwargs)

    in_specs = [
        pl.BlockSpec((tn, d), lambda i, j: (i, 0)),   # x: streamed per N tile
        w_spec,
    ]
    out_specs = pl.BlockSpec((tn, tj), lambda i, j: (i, j))

    # --- VMEM limit / cost estimate -----------------------------------------
    needed = (w_buffers * w_block_bytes
              + 2 * tn * d * x_itemsize
              + 2 * tn * tj * out_dtype.itemsize
              + slack)
    vmem_limit = int(min(max(needed, 32 << 20), budget))

    flops = 2 * n * d * d
    transcendentals = n * d if non_lin in ("tanh", "sigmoid") else 0
    w_reads = 1 if grid_j == 1 else grid_n
    bytes_accessed = int(n * d * (x_itemsize + out_dtype.itemsize)
                         + w_reads * d * d * w_itemsize)

    kernel = functools.partial(_mapping_kernel, non_lin=non_lin)

    return pl.pallas_call(
        kernel,
        out_shape=jax.ShapeDtypeStruct((n, d), out_dtype),
        grid_spec=pltpu.PrefetchScalarGridSpec(
            num_scalar_prefetch=0,
            grid=(grid_n, grid_j),
            in_specs=in_specs,
            out_specs=out_specs,
        ),
        compiler_params=pltpu.CompilerParams(
            # N tiles and output-column tiles are fully independent.
            dimension_semantics=("parallel", "parallel"),
            vmem_limit_bytes=vmem_limit,
        ),
        cost_estimate=pl.CostEstimate(
            flops=flops,
            transcendentals=transcendentals,
            bytes_accessed=bytes_accessed,
        ),
    )(x, w_t)


if __name__ == "__main__":
    key = jax.random.PRNGKey(0)
    k1, k2, k3, k4, k5, k6 = jax.random.split(key, 6)

    # --- Test 1: module defaults (identity weight init, tanh). --------------
    emb_dim, batch = 32, 8
    x1 = jax.random.normal(k1, (batch, emb_dim), dtype=jnp.float32)
    w1 = jnp.eye(emb_dim, dtype=jnp.float32)      # torch.diag(torch.ones(d))
    out1 = jax.block_until_ready(mapping_forward(x1, w1, non_lin="tanh"))
    ref1 = jnp.tanh(x1 @ w1.T)
    assert out1.shape == (batch, emb_dim)
    assert jnp.allclose(out1, ref1, atol=1e-5, rtol=1e-5)

    # --- Test 2: unaligned emb_dim (full-extent feature blocks, no pad). ----
    d2, n2 = 40, 10
    x2 = jax.random.normal(k2, (n2, d2), dtype=jnp.float32)
    w2 = jax.random.normal(k3, (d2, d2), dtype=jnp.float32) * 0.1
    out2 = jax.block_until_ready(mapping_forward(x2, w2, non_lin="sigmoid"))
    ref2 = jax.nn.sigmoid(x2 @ w2.T)
    assert out2.shape == (n2, d2)
    assert jnp.allclose(out2, ref2, atol=1e-5, rtol=1e-5)

    # --- Test 3: ragged last N tile (N not a multiple of tile_n). -----------
    d3, n3 = 48, 70
    x3 = jax.random.normal(k4, (n3, d3), dtype=jnp.float32)
    w3 = jax.random.normal(k5, (d3, d3), dtype=jnp.float32) * 0.1
    out3 = jax.block_until_ready(
        mapping_forward(x3, w3, non_lin="relu", tile_n=16))
    ref3 = jnp.maximum(x3 @ w3.T, 0.0)
    assert out3.shape == (n3, d3)
    assert jnp.allclose(out3, ref3, atol=1e-5, rtol=1e-5)

    # --- Test 4: forced output-column-tiled fallback (large-emb_dim path). --
    d4, n4 = 256, 24
    x4 = jax.random.normal(k6, (n4, d4), dtype=jnp.float32)
    w4 = jax.random.normal(k1, (d4, d4), dtype=jnp.float32) * 0.05
    out4 = jax.block_until_ready(
        mapping_forward(x4, w4, non_lin="none",
                        max_resident_weight_bytes=0, tile_j=128))
    ref4 = x4 @ w4.T
    assert out4.shape == (n4, d4)
    assert jnp.allclose(out4, ref4, atol=1e-4, rtol=1e-3)

    print("KERNEL_OK")
</pallas_src>

<mosaic_0001>
module attributes {stable_mosaic.version = 11 : i64} {
  func.func @_mapping_kernel(%arg0: i32, %arg1: i32, %arg2: memref<8x32xf32, #tpu.memory_space<vmem>>, %arg3: memref<32x32xf32, #tpu.memory_space<vmem>>, %arg4: memref<8x32xf32, #tpu.memory_space<vmem>>) attributes {dimension_semantics = [#tpu.dimension_semantics<parallel>, #tpu.dimension_semantics<parallel>], iteration_bounds = array<i64: 1, 1>, scalar_prefetch = 0 : i64, scratch_operands = 0 : i64, tpu.core_type = #tpu.core_type<tc>, window_params = [{transform_indices = @transform_0, window_bounds = array<i64: 8, 32>}, {transform_indices = @transform_1, window_bounds = array<i64: 32, 32>}, {transform_indices = @transform_2, window_bounds = array<i64: 8, 32>}]} {
    %c0 = arith.constant 0 : index
    %c0_0 = arith.constant 0 : index
    %0 = vector.load %arg2[%c0, %c0_0] : memref<8x32xf32, #tpu.memory_space<vmem>>, vector<8x32xf32>
    %c0_1 = arith.constant 0 : index
    %c0_2 = arith.constant 0 : index
    %1 = vector.load %arg3[%c0_1, %c0_2] : memref<32x32xf32, #tpu.memory_space<vmem>>, vector<32x32xf32>
    %cst = arith.constant dense<0.000000e+00> : vector<8x32xf32>
    %2 = tpu.matmul %0, %1, %cst {dimension_numbers = #tpu.dot_dimension_numbers<[1], [0], [0], [1], [0, 0, 1, 1], [], []>} : vector<8x32xf32>, vector<32x32xf32>, vector<8x32xf32> -> vector<8x32xf32>
    %3 = math.tanh %2 : vector<8x32xf32>
    %c0_3 = arith.constant 0 : index
    %c0_4 = arith.constant 0 : index
    %4 = vector.load %arg4[%c0_3, %c0_4] : memref<8x32xf32, #tpu.memory_space<vmem>>, vector<8x32xf32>
    tpu.vector_store %arg4[%c0_3, %c0_4], %3 {strides = array<i32>} : memref<8x32xf32, #tpu.memory_space<vmem>>, vector<8x32xf32>,
    return
  }
  func.func @transform_0(%arg0: i32, %arg1: i32) -> (i32, i32) {
    %c0_i32 = arith.constant 0 : i32
    %c0_i32_0 = arith.constant 0 : i32
    return %arg0, %c0_i32 : i32, i32
  }
  func.func @transform_1(%arg0: i32, %arg1: i32) -> (i32, i32) {
    %c0_i32 = arith.constant 0 : i32
    %c0_i32_0 = arith.constant 0 : i32
    return %c0_i32, %arg1 : i32, i32
  }
  func.func @transform_2(%arg0: i32, %arg1: i32) -> (i32, i32) {
    %c0_i32 = arith.constant 0 : i32
    return %arg0, %arg1 : i32, i32
  }
}

</mosaic_0001>

<bundles_post_ra>
// kernel: tpu_custom_call.1
= control target key start
LH: loop header
LB: loop body
LE: loop exit
PB: predicated region body
PF: predicated region fallthrough
CT: control target
= control target key end

     0   :  { %7 = vsyncpa [#allocation3], 0  ;;  %s306_s0 = inlined_call_operand.hbm [shape: f32[8,32], index: 0, kind: input, shape index: {}]   ;;  %s307_s1 = inlined_call_operand.hbm [shape: f32[32,32], index: 1, kind: input, shape index: {}]   ;;  %s308_s2 = inlined_call_operand.hbm [shape: f32[8,32], index: 2, kind: output, shape index: {}]  }
   0x1   :  { %8 = vsyncpa [#allocation6], 0 }
   0x2   :  { %9 = vsyncpa [#allocation4], 0  ;;  %s240_s9 = smov [#allocation2]   ;;  %s241_s11 = smov [#allocation5]  }
   0x3   :  { %s16_s10 = sshll.u32 %s240_s9, 4  ;;  %s25_s12 = sshll.u32 %s241_s11, 4  ;;  %s17_s10 = int_to_ptr.vmem [resolvable:$true] %s16_s10  ;;  %s263_s12 = int_to_ptr.vmem [resolvable:$true] %s25_s12 }
   0x4   :  { %s168_s15 = scalar_lea.hbm %s306_s0, 128 }
   0x5   :  { %p169_p0 = scmp.ne.s32.totalorder %s306_s0, %s168_s15  ;;  %p172_p1 = scmp.lt.u32.totalorder %s168_s15, %s306_s0 }
   0x7   :  { %p174_p2 = pnand %p172_p1, %p169_p0 }
   0x9   :  { %177 = shalt.err (!%p174_p2)
}
   0xa   :  { %s178_s20 = scalar_lea.vmem %s17_s10, 128  ;;  %p183_p4 = scmp.lt.s32.totalorder %s17_s10, %s17_s10 }
   0xb   :  { %p179_p3 = scmp.ne.s32.totalorder %s17_s10, %s178_s20  ;;  %p184_p5 = scmp.lt.s32.totalorder %s178_s20, %s178_s20 }
   0xd   :  { %p185_p6 = por %p184_p5, %p183_p4 }
   0xf   :  { %p186_p7 = pnand %p185_p6, %p179_p3 }
  0x11   :  { %189 = shalt.err (!%p186_p7)
}
  0x12   :  { %19 = dma.hbm_to_vmem [thread:$0]  %s306_s0, 128, %s17_s10, [#allocation3]  }
  0x13   :  { %s190_s25 = scalar_lea.hbm %s307_s1, 512 }
  0x14   :  { %p191_p8 = scmp.ne.s32.totalorder %s307_s1, %s190_s25  ;;  %p194_p9 = scmp.lt.u32.totalorder %s190_s25, %s307_s1 }
  0x16   :  { %p196_p10 = pnand %p194_p9, %p191_p8 }
  0x18   :  { %199 = shalt.err (!%p196_p10)
}
  0x19   :  { %s200_s30 = scalar_lea.vmem %s263_s12, 512  ;;  %p205_p12 = scmp.lt.s32.totalorder %s263_s12, %s263_s12 }
  0x1a   :  { %p201_p11 = scmp.ne.s32.totalorder %s263_s12, %s200_s30  ;;  %p206_p13 = scmp.lt.s32.totalorder %s200_s30, %s200_s30 }
  0x1c   :  { %p207_p0 = por %p206_p13, %p205_p12 }
  0x1e   :  { %p208_p1 = pnand %p207_p0, %p201_p11 }
  0x20   :  { %211 = shalt.err (!%p208_p1)
}
  0x21   :  { %s242_s0 = smov 128   ;;  %s243_s3 = smov 8  }
  0x22   :  { %31 = dma.hbm_to_vmem [thread:$0]  %s307_s1, 512, %s263_s12, [#allocation6], %s242_s0, %s242_s0, %s243_s3  }
  0x23   :  { %234 = dma.done.wait [#allocation3], 128  }
  0x24   :  { %235 = vsyncadd [#allocation3], 4294967168 }
  0x25   :  { %236 = dma.done.wait [#allocation6], 512  }
  0x26   :  { %237 = vsyncadd [#allocation6], 4294966784  ;;  %v244_v0 = vmov 0.0|0.0   ;;  %vm245_vm0 = vmmov 0   ;;  %v246_v1 = vmov 0.0   ;;  %v39_v2 = vld [vmem:[#allocation5] sm:$0xff] }
  0x27   :  { %152 = vmatprep.subr.bf16.mxu0 %v244_v0  ;;  %149 = vmatprep.mubr.msk.f32.mxu0 %vm245_vm0, %v246_v1  ;;  %v40_v3 = vld [vmem:[#allocation5 + $0x8] sm:$0xff]  ;;  %v41_v4 = vld [vmem:[#allocation5 + $0x10] sm:$0xff]  ;;  %v42_v6 = vld [vmem:[#allocation5 + $0x18] sm:$0xff]  ;;  %vm43_vm1 = vcmask 261120   ;;  %s247_s1 = smov [#allocation7]  }
  0x28   :  { %v153_v5 = vpack.c.bf16 %v40_v3, %v39_v2  ;;  %v156_v7 = vpack.c.bf16 %v42_v6, %v41_v4  ;;  %v38_v8 = vld [vmem:[#allocation2] sm:$0xff]  ;;  %s125_s6 = sshll.u32 %s247_s1, 4  ;;  %s126_s6 = int_to_ptr.vmem [resolvable:$true] %s125_s6 }
  0x29   :  { %s212_s7 = scalar_lea.vmem %s126_s6, 128  ;;  %p217_p3 = scmp.lt.s32.totalorder %s126_s6, %s126_s6 }
  0x2a   :  { %154 = vmatpush3.bf16.msra.mxu0 %v153_v5  ;;  %p213_p2 = scmp.ne.s32.totalorder %s126_s6, %s212_s7  ;;  %p218_p4 = scmp.lt.s32.totalorder %s212_s7, %s212_s7 }
  0x2b   :  { %155 = vmatprep.subr.bf16.mxu0 %v244_v0 }
  0x2c   :  { %p219_p5 = por %p218_p4, %p217_p3 }
  0x2e   :  { %157 = vmatpush3.bf16.msra.mxu0 %v156_v7  ;;  %p220_p6 = pnand %p219_p5, %p213_p2 }
  0x31   :  { %150 = vmatmul.mubr.msk.f32.vlgmr.msra.gmra.mrb[0].mxu0 %vm43_vm1, %v38_v8 }
 0x104   :  { %v113_v9 = vpop.f32.mrb[0].mxu0 }
 0x105   :  { %166 = vtanh.f32 %v113_v9  ;;  %v151_v10 = vpop.f32.mrb[1].mxu0 }
 0x10f   :  { %v167_v11 = vpop.eup %166 }
 0x110   :  { %118 = vst.msk [vmem:[#allocation7] sm:$0xff] %vm43_vm1, %v167_v11 }
 0x111   :  { %223 = shalt.err (!%p220_p6)
}
 0x112   :  { %s224_s10 = scalar_lea.hbm %s308_s2, 128 }
 0x113   :  { %p225_p7 = scmp.ne.s32.totalorder %s308_s2, %s224_s10  ;;  %p228_p8 = scmp.lt.u32.totalorder %s224_s10, %s308_s2 }
 0x115   :  { %p230_p9 = pnand %p228_p8, %p225_p7 }
 0x117   :  { %233 = shalt.err (!%p230_p9)
}
 0x118   :  { %128 = dma.vmem_to_hbm [thread:$0]  %s126_s6, 128, %s308_s2, [#allocation4]  }
 0x119   :  { %238 = dma.done.wait [#allocation4], 128  }
 0x11a   :  { %239 = vsyncadd [#allocation4], 4294967168 }
 0x11b   :  { %132 = vsyncpa [#allocation3], 1 }
 0x11c   :  { %133 = vsyncpa [#allocation6], 1 }
 0x11d   :  { %134 = vsyncpa [#allocation4], 1 }

</bundles_post_ra>
